<compile_context>
chip_gen: v7x
topology: tpu7x:2x2x1
jax: 0.10.0
libtpu: 0.0.40
codegen_flags: <defaults>
</compile_context>

<pallas_src>
import jax
import jax.numpy as jnp
from jax.experimental import pallas as pl
from jax.experimental.pallas import tpu as pltpu


def mlp_kernel(x_ref, w1_ref, b1_ref, w2_ref, b2_ref, w3_ref, b3_ref, o_ref):
    # x_ref: (TILE_B, F) f32; weights bf16; biases f32; o_ref: (TILE_B, C_pad) bf16.
    x = x_ref[...].astype(w1_ref.dtype)               # f32 -> bf16 cast in VMEM (free-ish)

    h1 = jnp.dot(x, w1_ref[...], preferred_element_type=jnp.float32)
    h1 = jnp.maximum(h1 + b1_ref[...], 0.0)           # bias + ReLU on f32 accumulator
    # Dropout(0.4) -> identity (eval mode)

    h2 = jnp.dot(h1.astype(w2_ref.dtype), w2_ref[...],
                 preferred_element_type=jnp.float32)
    h2 = jnp.maximum(h2 + b2_ref[...], 0.0)
    # Dropout(0.4) -> identity (eval mode)

    logits = jnp.dot(h2.astype(w3_ref.dtype), w3_ref[...],
                     preferred_element_type=jnp.float32)
    o_ref[...] = (logits + b3_ref[...]).astype(o_ref.dtype)


def init_params(key, input_features, output_classes, dtype=jnp.float32):
    """Deterministic PyTorch-Linear-style init (uniform +/- 1/sqrt(fan_in)).

    Weights stored as (in_features, out_features) so the kernel computes x @ W + b;
    biases stored as (1, out_features) rows.
    """
    dims = [(input_features, 10), (10, 8), (8, output_classes)]
    params = []
    for i, (fan_in, fan_out) in enumerate(dims):
        kw, kb = jax.random.split(jax.random.fold_in(key, i))
        bound = 1.0 / jnp.sqrt(jnp.asarray(fan_in, dtype))
        w = jax.random.uniform(kw, (fan_in, fan_out), dtype, -bound, bound)
        b = jax.random.uniform(kb, (1, fan_out), dtype, -bound, bound)
        params += [w, b]
    return tuple(params)


def sequential_model_pcp(x_nchw, params, *, tile_b=2048, compute_dtype=jnp.bfloat16):
    w1, b1, w2, b2, w3, b3 = params
    B = x_nchw.shape[0]
    F = w1.shape[0]
    H1 = w1.shape[1]
    H2 = w2.shape[1]
    C = w3.shape[1]
    LANE = 128

    # nn.Flatten (row-major over NCHW). Streamed as f32 directly -- no separate
    # wrapper-side cast pass over HBM.
    x2d = x_nchw.reshape(B, -1).astype(jnp.float32)

    def rup8(n):
        return ((n + 7) // 8) * 8

    # Batch tiling: multiple of 8 (or the full batch when B <= 8), capped at tile_b.
    # When B is large enough, keep >= 2 tiles so v7x's 2 TensorCores both get work.
    tile_cap = max(8, rup8(tile_b))
    if B <= 8:
        TILE_B = B                      # block dim equals full array dim -> always legal
    else:
        TILE_B = min(tile_cap, rup8(pl.cdiv(B, 2)))
    n_tiles = pl.cdiv(B, TILE_B)        # ragged last block handled by masked writeback

    # Lane-dense output: pad last layer to a 128-multiple of columns.
    C_pad = ((C + LANE - 1) // LANE) * LANE
    w3p = jnp.pad(w3, ((0, 0), (0, C_pad - C)))
    b3p = jnp.pad(b3, ((0, 0), (0, C_pad - C)))

    # Weights in bf16 (native MXU input); biases kept f32.
    w1c = w1.astype(compute_dtype)
    w2c = w2.astype(compute_dtype)
    w3c = w3p.astype(compute_dtype)
    b1f = b1.astype(jnp.float32)
    b2f = b2.astype(jnp.float32)
    b3f = b3p.astype(jnp.float32)

    const = lambda i: (0, 0)   # weights/biases stay resident (no per-step re-DMA)

    wsz = jnp.dtype(compute_dtype).itemsize
    cost = pl.CostEstimate(
        flops=2 * B * (F * H1 + H1 * H2 + H2 * C_pad),
        transcendentals=0,
        bytes_accessed=(B * F * 4                                    # f32 x read
                        + (F * H1 + H1 * H2 + H2 * C_pad) * wsz      # bf16 weights
                        + (H1 + H2 + C_pad) * 4                      # f32 biases
                        + B * C_pad * 2),                            # bf16 out write
    )

    out = pl.pallas_call(
        mlp_kernel,
        out_shape=jax.ShapeDtypeStruct((B, C_pad), jnp.bfloat16),
        grid=(n_tiles,),
        in_specs=[
            pl.BlockSpec((TILE_B, F), lambda i: (i, 0)),   # streamed x tiles
            pl.BlockSpec((F, H1), const),
            pl.BlockSpec((1, H1), const),
            pl.BlockSpec((H1, H2), const),
            pl.BlockSpec((1, H2), const),
            pl.BlockSpec((H2, C_pad), const),
            pl.BlockSpec((1, C_pad), const),
        ],
        out_specs=pl.BlockSpec((TILE_B, C_pad), lambda i: (i, 0)),
        compiler_params=pltpu.CompilerParams(
            dimension_semantics=("parallel",),   # shard batch grid across v7x's 2 TCs
            vmem_limit_bytes=48 << 20,           # fits v7x (64 MiB physical) with headroom
        ),
        cost_estimate=cost,
    )(x2d, w1c, b1f, w2c, b2f, w3c, b3f)

    return out[:, :C].astype(jnp.float32)


def reference_forward(x_nchw, params):
    """Plain-JAX f32 reference (eval-mode dropout)."""
    w1, b1, w2, b2, w3, b3 = params
    x = x_nchw.reshape(x_nchw.shape[0], -1)
    h1 = jnp.maximum(x @ w1 + b1, 0.0)
    h2 = jnp.maximum(h1 @ w2 + b2, 0.0)
    return h2 @ w3 + b3


if __name__ == "__main__":
    key = jax.random.PRNGKey(0)
    kx, kp = jax.random.split(key)

    # Small shapes consistent with the module: NCHW input flattened to features.
    B, Cin, H, W = 2, 4, 16, 16
    input_features = Cin * H * W        # 1024
    output_classes = 3

    x = jax.random.normal(kx, (B, Cin, H, W), dtype=jnp.float32)
    params = init_params(kp, input_features, output_classes)

    out = sequential_model_pcp(x, params)
    out = jax.block_until_ready(out)

    ref = reference_forward(x, params)
    assert out.shape == (B, output_classes)
    # bf16 matmul inputs / bf16 output with f32 accumulation -> relaxed tolerance.
    assert jnp.allclose(out, ref, atol=5e-2, rtol=5e-2)

    print("KERNEL_OK")
</pallas_src>

<mosaic_0001>
module attributes {stable_mosaic.version = 11 : i64} {
  func.func @mlp_kernel(%arg0: i32, %arg1: memref<2x1024xf32, #tpu.memory_space<vmem>>, %arg2: memref<1024x10xbf16, #tpu.memory_space<vmem>>, %arg3: memref<1x10xf32, #tpu.memory_space<vmem>>, %arg4: memref<10x8xbf16, #tpu.memory_space<vmem>>, %arg5: memref<1x8xf32, #tpu.memory_space<vmem>>, %arg6: memref<8x128xbf16, #tpu.memory_space<vmem>>, %arg7: memref<1x128xf32, #tpu.memory_space<vmem>>, %arg8: memref<2x128xbf16, #tpu.memory_space<vmem>>) attributes {dimension_semantics = [#tpu.dimension_semantics<parallel>], iteration_bounds = array<i64: 1>, scalar_prefetch = 0 : i64, scratch_operands = 0 : i64, tpu.core_type = #tpu.core_type<tc>, window_params = [{transform_indices = @transform_0, window_bounds = array<i64: 2, 1024>}, {pipeline_mode = #tpu.pipeline_mode<synchronous>, transform_indices = @transform_1, window_bounds = array<i64: 1024, 10>}, {pipeline_mode = #tpu.pipeline_mode<synchronous>, transform_indices = @transform_2, window_bounds = array<i64: 1, 10>}, {pipeline_mode = #tpu.pipeline_mode<synchronous>, transform_indices = @transform_3, window_bounds = array<i64: 10, 8>}, {pipeline_mode = #tpu.pipeline_mode<synchronous>, transform_indices = @transform_4, window_bounds = array<i64: 1, 8>}, {pipeline_mode = #tpu.pipeline_mode<synchronous>, transform_indices = @transform_5, window_bounds = array<i64: 8, 128>}, {pipeline_mode = #tpu.pipeline_mode<synchronous>, transform_indices = @transform_6, window_bounds = array<i64: 1, 128>}, {transform_indices = @transform_7, window_bounds = array<i64: 2, 128>}]} {
    %c0 = arith.constant 0 : index
    %c0_0 = arith.constant 0 : index
    %0 = vector.load %arg1[%c0, %c0_0] : memref<2x1024xf32, #tpu.memory_space<vmem>>, vector<2x1024xf32>
    %1 = arith.truncf %0 : vector<2x1024xf32> to vector<2x1024xbf16>
    %c0_1 = arith.constant 0 : index
    %c0_2 = arith.constant 0 : index
    %2 = vector.load %arg2[%c0_1, %c0_2] : memref<1024x10xbf16, #tpu.memory_space<vmem>>, vector<1024x10xbf16>
    %cst = arith.constant dense<0.000000e+00> : vector<2x10xf32>
    %3 = tpu.matmul %1, %2, %cst {dimension_numbers = #tpu.dot_dimension_numbers<[1], [0], [0], [1], [0, 0, 1, 1], [], []>} : vector<2x1024xbf16>, vector<1024x10xbf16>, vector<2x10xf32> -> vector<2x10xf32>
    %c0_3 = arith.constant 0 : index
    %c0_4 = arith.constant 0 : index
    %4 = vector.load %arg3[%c0_3, %c0_4] : memref<1x10xf32, #tpu.memory_space<vmem>>, vector<1x10xf32>
    %5 = vector.broadcast %4 : vector<1x10xf32> to vector<2x10xf32>
    %6 = arith.addf %3, %5 : vector<2x10xf32>
    %cst_5 = arith.constant 0.000000e+00 : f32
    %7 = vector.broadcast %cst_5 : f32 to vector<2x10xf32>
    %8 = arith.maximumf %6, %7 : vector<2x10xf32>
    %9 = arith.truncf %8 : vector<2x10xf32> to vector<2x10xbf16>
    %c0_6 = arith.constant 0 : index
    %c0_7 = arith.constant 0 : index
    %10 = vector.load %arg4[%c0_6, %c0_7] : memref<10x8xbf16, #tpu.memory_space<vmem>>, vector<10x8xbf16>
    %cst_8 = arith.constant dense<0.000000e+00> : vector<2x8xf32>
    %11 = tpu.matmul %9, %10, %cst_8 {dimension_numbers = #tpu.dot_dimension_numbers<[1], [0], [0], [1], [0, 0, 1, 1], [], []>} : vector<2x10xbf16>, vector<10x8xbf16>, vector<2x8xf32> -> vector<2x8xf32>
    %c0_9 = arith.constant 0 : index
    %c0_10 = arith.constant 0 : index
    %12 = vector.load %arg5[%c0_9, %c0_10] : memref<1x8xf32, #tpu.memory_space<vmem>>, vector<1x8xf32>
    %13 = vector.broadcast %12 : vector<1x8xf32> to vector<2x8xf32>
    %14 = arith.addf %11, %13 : vector<2x8xf32>
    %cst_11 = arith.constant 0.000000e+00 : f32
    %15 = vector.broadcast %cst_11 : f32 to vector<2x8xf32>
    %16 = arith.maximumf %14, %15 : vector<2x8xf32>
    %17 = arith.truncf %16 : vector<2x8xf32> to vector<2x8xbf16>
    %c0_12 = arith.constant 0 : index
    %c0_13 = arith.constant 0 : index
    %18 = vector.load %arg6[%c0_12, %c0_13] : memref<8x128xbf16, #tpu.memory_space<vmem>>, vector<8x128xbf16>
    %cst_14 = arith.constant dense<0.000000e+00> : vector<2x128xf32>
    %19 = tpu.matmul %17, %18, %cst_14 {dimension_numbers = #tpu.dot_dimension_numbers<[1], [0], [0], [1], [0, 0, 1, 1], [], []>} : vector<2x8xbf16>, vector<8x128xbf16>, vector<2x128xf32> -> vector<2x128xf32>
    %c0_15 = arith.constant 0 : index
    %c0_16 = arith.constant 0 : index
    %20 = vector.load %arg7[%c0_15, %c0_16] : memref<1x128xf32, #tpu.memory_space<vmem>>, vector<1x128xf32>
    %21 = vector.broadcast %20 : vector<1x128xf32> to vector<2x128xf32>
    %22 = arith.addf %19, %21 : vector<2x128xf32>
    %23 = arith.truncf %22 : vector<2x128xf32> to vector<2x128xbf16>
    %c0_17 = arith.constant 0 : index
    %c0_18 = arith.constant 0 : index
    %24 = vector.load %arg8[%c0_17, %c0_18] : memref<2x128xbf16, #tpu.memory_space<vmem>>, vector<2x128xbf16>
    tpu.vector_store %arg8[%c0_17, %c0_18], %23 {strides = array<i32>} : memref<2x128xbf16, #tpu.memory_space<vmem>>, vector<2x128xbf16>,
    return
  }
  func.func @transform_0(%arg0: i32) -> (i32, i32) {
    %c0_i32 = arith.constant 0 : i32
    %c0_i32_0 = arith.constant 0 : i32
    return %arg0, %c0_i32 : i32, i32
  }
  func.func @transform_1(%arg0: i32) -> (i32, i32) {
    %c0_i32 = arith.constant 0 : i32
    %c0_i32_0 = arith.constant 0 : i32
    %c0_i32_1 = arith.constant 0 : i32
    return %c0_i32, %c0_i32_0 : i32, i32
  }
  func.func @transform_2(%arg0: i32) -> (i32, i32) {
    %c0_i32 = arith.constant 0 : i32
    %c0_i32_0 = arith.constant 0 : i32
    %c0_i32_1 = arith.constant 0 : i32
    return %c0_i32, %c0_i32_0 : i32, i32
  }
  func.func @transform_3(%arg0: i32) -> (i32, i32) {
    %c0_i32 = arith.constant 0 : i32
    %c0_i32_0 = arith.constant 0 : i32
    %c0_i32_1 = arith.constant 0 : i32
    return %c0_i32, %c0_i32_0 : i32, i32
  }
  func.func @transform_4(%arg0: i32) -> (i32, i32) {
    %c0_i32 = arith.constant 0 : i32
    %c0_i32_0 = arith.constant 0 : i32
    %c0_i32_1 = arith.constant 0 : i32
    return %c0_i32, %c0_i32_0 : i32, i32
  }
  func.func @transform_5(%arg0: i32) -> (i32, i32) {
    %c0_i32 = arith.constant 0 : i32
    %c0_i32_0 = arith.constant 0 : i32
    %c0_i32_1 = arith.constant 0 : i32
    return %c0_i32, %c0_i32_0 : i32, i32
  }
  func.func @transform_6(%arg0: i32) -> (i32, i32) {
    %c0_i32 = arith.constant 0 : i32
    %c0_i32_0 = arith.constant 0 : i32
    %c0_i32_1 = arith.constant 0 : i32
    return %c0_i32, %c0_i32_0 : i32, i32
  }
  func.func @transform_7(%arg0: i32) -> (i32, i32) {
    %c0_i32 = arith.constant 0 : i32
    %c0_i32_0 = arith.constant 0 : i32
    return %arg0, %c0_i32 : i32, i32
  }
}

</mosaic_0001>

<bundles_post_ra>
// kernel: tpu_custom_call.1
= control target key start
LH: loop header
LB: loop body
LE: loop exit
PB: predicated region body
PF: predicated region fallthrough
CT: control target
= control target key end

     0   :  { %v36_v28 = vlaneseq  ;;  %v1168_v36 = vmov 1983009808   ;;  %s1443_s0 = inlined_call_operand.vmem [shape: f32[2,1024], index: 0, kind: input, shape index: {}]   ;;  %s1444_s1 = inlined_call_operand.vmem [shape: bf16[1024,10], index: 1, kind: input, shape index: {}]   ;;  %s1445_s2 = inlined_call_operand.vmem [shape: f32[1,10], index: 2, kind: input, shape index: {}]   ;;  %s1446_s3 = inlined_call_operand.vmem [shape: bf16[10,8], index: 3, kind: input, shape index: {}]   ;;  %s1447_s4 = inlined_call_operand.vmem [shape: f32[1,8], index: 4, kind: input, shape index: {}]   ;;  %s1448_s5 = inlined_call_operand.vmem [shape: bf16[8,128], index: 5, kind: input, shape index: {}]   ;;  %s1449_s6 = inlined_call_operand.vmem [shape: f32[1,128], index: 6, kind: input, shape index: {}]   ;;  %s1450_s7 = inlined_call_operand.hbm [shape: bf16[2,128], index: 7, kind: output, shape index: {}]  }
   0x1   :  { %v1077_v0 = vld [vmem:[%s1444_s1 + $0x40] sm:$0xff]   ;;  %v1081_v4 = vld [vmem:[%s1444_s1 + $0x48] sm:$0xff]   ;;  %v1085_v8 = vld [vmem:[%s1444_s1 + $0x50] sm:$0xff]   ;;  %v34_v37 = vunpack.c.l.s4 %v1168_v36 }
   0x2   :  { %v1078_v1 = vld [vmem:[%s1444_s1 + $0xc0] sm:$0xff]   ;;  %969 = vmatprep.subr.bf16.mxu0 %v1077_v0  ;;  %v1082_v5 = vld [vmem:[%s1444_s1 + $0xc8] sm:$0xff]   ;;  %v1086_v9 = vld [vmem:[%s1444_s1 + $0xd0] sm:$0xff]   ;;  %v37_v33 = vshrl.u32 %v36_v28, 7 }
   0x3   :  { %v1079_v2 = vld [vmem:[%s1444_s1] sm:$0xff]   ;;  %991 = vmatprep.subr.bf16.mxu1 %v1078_v1  ;;  %v1083_v6 = vld [vmem:[%s1444_s1 + $0x8] sm:$0xff]   ;;  %v1087_v10 = vld [vmem:[%s1444_s1 + $0x10] sm:$0xff]   ;;  %v35_v39 = vunpack.c.0.s8 %v34_v37 }
   0x4   :  { %v1080_v3 = vld [vmem:[%s1444_s1 + $0x80] sm:$0xff]   ;;  %970 = vmatpush3.bf16.msra.mxu0 %v1079_v2  ;;  %v1084_v7 = vld [vmem:[%s1444_s1 + $0x88] sm:$0xff]   ;;  %v1088_v11 = vld [vmem:[%s1444_s1 + $0x90] sm:$0xff]  }
   0x5   :  { %992 = vmatpush3.bf16.msra.mxu1 %v1080_v3  ;;  %971 = vmatprep.subr.bf16.mxu0 %v1081_v4  ;;  %v1089_v12 = vld [vmem:[%s1444_s1 + $0x58] sm:$0xff]   ;;  %v1093_v16 = vld [vmem:[%s1444_s1 + $0x60] sm:$0xff]   ;;  %v1097_v20 = vld [vmem:[%s1444_s1 + $0x68] sm:$0xff]   ;;  %v1317_v41 = vsub.s32 %v35_v39, %v37_v33 }
   0x6   :  { %993 = vmatprep.subr.bf16.mxu1 %v1082_v5  ;;  %v1090_v13 = vld [vmem:[%s1444_s1 + $0xd8] sm:$0xff]   ;;  %v1094_v17 = vld [vmem:[%s1444_s1 + $0xe0] sm:$0xff]   ;;  %v1098_v21 = vld [vmem:[%s1444_s1 + $0xe8] sm:$0xff]  }
   0x7   :  { %v1091_v14 = vld [vmem:[%s1444_s1 + $0x18] sm:$0xff]   ;;  %v1095_v18 = vld [vmem:[%s1444_s1 + $0x20] sm:$0xff]   ;;  %v1099_v22 = vld [vmem:[%s1444_s1 + $0x28] sm:$0xff]  }
   0x8   :  { %972 = vmatpush3.bf16.msra.mxu0 %v1083_v6  ;;  %v1092_v15 = vld [vmem:[%s1444_s1 + $0x98] sm:$0xff]   ;;  %v1096_v19 = vld [vmem:[%s1444_s1 + $0xa0] sm:$0xff]   ;;  %v1100_v23 = vld [vmem:[%s1444_s1 + $0xa8] sm:$0xff]  }
   0x9   :  { %994 = vmatpush3.bf16.msra.mxu1 %v1084_v7  ;;  %973 = vmatprep.subr.bf16.mxu0 %v1085_v8  ;;  %v1101_v24 = vld [vmem:[%s1444_s1 + $0x70] sm:$0xff]   ;;  %v1105_v29 = vld [vmem:[%s1444_s1 + $0x78] sm:$0xff]   ;;  %v28_v34 = vld [vmem:[%s1443_s0] sm:$0xff] }
   0xa   :  { %995 = vmatprep.subr.bf16.mxu1 %v1086_v9  ;;  %v1102_v25 = vld [vmem:[%s1444_s1 + $0xf0] sm:$0xff]   ;;  %v1106_v30 = vld [vmem:[%s1444_s1 + $0xf8] sm:$0xff]   ;;  %v1110_v35 = vld [vmem:[%s1444_s1 + $0x140] sm:$0xff]   ;;  %v32_v40 = vcombine.high %v28_v34, %v28_v34  ;;  %v39_v42 = vrot.slane %v28_v34, %v1317_v41 }
   0xb   :  { %v1103_v26 = vld [vmem:[%s1444_s1 + $0x30] sm:$0xff]   ;;  %v1107_v31 = vld [vmem:[%s1444_s1 + $0x38] sm:$0xff]   ;;  %v1111_v38 = vld [vmem:[%s1444_s1 + $0x1c0] sm:$0xff]  }
   0xc   :  { %974 = vmatpush3.bf16.msra.mxu0 %v1087_v10  ;;  %v1104_v27 = vld [vmem:[%s1444_s1 + $0xb0] sm:$0xff]   ;;  %v1108_v32 = vld [vmem:[%s1444_s1 + $0xb8] sm:$0xff]   ;;  %v46_v43 = vrot.slane %v32_v40, %v1317_v41  ;;  %v47_v44 = vcombine.high %v39_v42, %v39_v42  ;;  %v1112_v46 = vld [vmem:[%s1444_s1 + $0x100] sm:$0xff]   ;;  %v74_v47 = vpack.c.bf16 %v39_v42, %v39_v42 }
   0xd   :  { %996 = vmatpush3.bf16.msra.mxu1 %v1088_v11  ;;  %975 = vmatprep.subr.bf16.mxu0 %v1089_v12  ;;  %v1113_v49 = vld [vmem:[%s1444_s1 + $0x180] sm:$0xff]   ;;  %v1114_v52 = vld [vmem:[%s1444_s1 + $0x148] sm:$0xff]   ;;  %v1118_v56 = vld [vmem:[%s1444_s1 + $0x150] sm:$0xff]  }
   0xe   :  { %997 = vmatprep.subr.bf16.mxu1 %v1090_v13  ;;  %v48_v45 = vcombine.high %v46_v43, %v46_v43  ;;  %v76_v48 = vpack.c.bf16 %v46_v43, %v46_v43  ;;  %v75_v50 = vpack.c.bf16 %v47_v44, %v47_v44  ;;  %v1115_v53 = vld [vmem:[%s1444_s1 + $0x1c8] sm:$0xff]   ;;  %v1119_v57 = vld [vmem:[%s1444_s1 + $0x1d0] sm:$0xff]   ;;  %v1122_v60 = vld [vmem:[%s1444_s1 + $0x158] sm:$0xff]  }
   0xf   :  { %v1116_v54 = vld [vmem:[%s1444_s1 + $0x108] sm:$0xff]   ;;  %v1120_v58 = vld [vmem:[%s1444_s1 + $0x110] sm:$0xff]   ;;  %v1123_v61 = vld [vmem:[%s1444_s1 + $0x1d8] sm:$0xff]  }
  0x10   :  { %976 = vmatpush3.bf16.msra.mxu0 %v1091_v14  ;;  %v77_v51 = vpack.c.bf16 %v48_v45, %v48_v45  ;;  %633 = vmatprep.mubr.bf16.mxu0 %v75_v50  ;;  %v1117_v55 = vld [vmem:[%s1444_s1 + $0x188] sm:$0xff]   ;;  %v1121_v59 = vld [vmem:[%s1444_s1 + $0x190] sm:$0xff]   ;;  %v1124_v62 = vld [vmem:[%s1444_s1 + $0x118] sm:$0xff]  }
  0x11   :  { %998 = vmatpush3.bf16.msra.mxu1 %v1092_v15  ;;  %977 = vmatprep.subr.bf16.mxu0 %v1093_v16  ;;  %v1125_v63 = vld [vmem:[%s1444_s1 + $0x198] sm:$0xff]   ;;  %v1126_v0 = vld [vmem:[%s1444_s1 + $0x160] sm:$0xff]   ;;  %v1130_v4 = vld [vmem:[%s1444_s1 + $0x168] sm:$0xff]  }
  0x12   :  { %999 = vmatprep.subr.bf16.mxu1 %v1094_v17  ;;  %673 = vmatprep.mubr.bf16.mxu1 %v77_v51  ;;  %v1127_v1 = vld [vmem:[%s1444_s1 + $0x1e0] sm:$0xff]   ;;  %v1131_v5 = vld [vmem:[%s1444_s1 + $0x1e8] sm:$0xff]   ;;  %v1134_v8 = vld [vmem:[%s1444_s1 + $0x170] sm:$0xff]  }
  0x13   :  { %v1128_v2 = vld [vmem:[%s1444_s1 + $0x120] sm:$0xff]   ;;  %v1132_v6 = vld [vmem:[%s1444_s1 + $0x128] sm:$0xff]   ;;  %v1135_v9 = vld [vmem:[%s1444_s1 + $0x1f0] sm:$0xff]  }
  0x14   :  { %978 = vmatpush3.bf16.msra.mxu0 %v1095_v18  ;;  %v1129_v3 = vld [vmem:[%s1444_s1 + $0x1a0] sm:$0xff]   ;;  %v1133_v7 = vld [vmem:[%s1444_s1 + $0x1a8] sm:$0xff]  }
  0x15   :  { %1000 = vmatpush3.bf16.msra.mxu1 %v1096_v19  ;;  %979 = vmatprep.subr.bf16.mxu0 %v1097_v20  ;;  %v29_v10 = vld [vmem:[%s1443_s0 + $0x8] sm:$0xff] }
  0x16   :  { %1001 = vmatprep.subr.bf16.mxu1 %v1098_v21  ;;  %v56_v11 = vrot.slane %v29_v10, %v1317_v41  ;;  %v49_v12 = vcombine.high %v29_v10, %v29_v10 }
  0x18   :  { %980 = vmatpush3.bf16.msra.mxu0 %v1099_v22 }
  0x19   :  { %1002 = vmatpush3.bf16.msra.mxu1 %v1100_v23  ;;  %981 = vmatprep.subr.bf16.mxu0 %v1101_v24 }
  0x1a   :  { %1003 = vmatprep.subr.bf16.mxu1 %v1102_v25 }
  0x1c   :  { %982 = vmatpush3.bf16.msra.mxu0 %v1103_v26 }
  0x1d   :  { %1004 = vmatpush3.bf16.msra.mxu1 %v1104_v27  ;;  %983 = vmatprep.subr.bf16.mxu0 %v1105_v29 }
  0x1e   :  { %1005 = vmatprep.subr.bf16.mxu1 %v1106_v30 }
  0x20   :  { %984 = vmatpush3.bf16.msra.mxu0 %v1107_v31 }
  0x21   :  { %1006 = vmatpush3.bf16.msra.mxu1 %v1108_v32  ;;  %1013 = vmatprep.subr.bf16.mxu0 %v1110_v35 }
  0x22   :  { %1035 = vmatprep.subr.bf16.mxu1 %v1111_v38 }
  0x23   :  { %634 = vmatmul.mubr.bf16.vlgmr.msra.gmra.mrb[0].mxu0 %v74_v47 }
  0x24   :  { %674 = vmatmul.mubr.bf16.vlgmr.msra.gmra.mrb[0].mxu1 %v76_v48  ;;  %1014 = vmatpush3.bf16.msra.mxu0 %v1112_v46 }
  0x25   :  { %1036 = vmatpush3.bf16.msra.mxu1 %v1113_v49  ;;  %1015 = vmatprep.subr.bf16.mxu0 %v1114_v52 }
  0x26   :  { %1037 = vmatprep.subr.bf16.mxu1 %v1115_v53 }
  0x28   :  { %1016 = vmatpush3.bf16.msra.mxu0 %v1116_v54 }
  0x29   :  { %1038 = vmatpush3.bf16.msra.mxu1 %v1117_v55  ;;  %1017 = vmatprep.subr.bf16.mxu0 %v1118_v56 }
  0x2a   :  { %1039 = vmatprep.subr.bf16.mxu1 %v1119_v57 }
  0x2c   :  { %1018 = vmatpush3.bf16.msra.mxu0 %v1120_v58 }
  0x2d   :  { %1040 = vmatpush3.bf16.msra.mxu1 %v1121_v59  ;;  %1019 = vmatprep.subr.bf16.mxu0 %v1122_v60 }
  0x2e   :  { %1041 = vmatprep.subr.bf16.mxu1 %v1123_v61 }
  0x30   :  { %1020 = vmatpush3.bf16.msra.mxu0 %v1124_v62 }
  0x31   :  { %1042 = vmatpush3.bf16.msra.mxu1 %v1125_v63  ;;  %1021 = vmatprep.subr.bf16.mxu0 %v1126_v0 }
  0x32   :  { %1043 = vmatprep.subr.bf16.mxu1 %v1127_v1 }
  0x34   :  { %1022 = vmatpush3.bf16.msra.mxu0 %v1128_v2 }
  0x35   :  { %1044 = vmatpush3.bf16.msra.mxu1 %v1129_v3  ;;  %1023 = vmatprep.subr.bf16.mxu0 %v1130_v4 }
  0x36   :  { %1045 = vmatprep.subr.bf16.mxu1 %v1131_v5 }
  0x37   :  { %12 = vsyncpa [#allocation3], 0  ;;  %v1136_v13 = vld [vmem:[%s1444_s1 + $0x130] sm:$0xff]   ;;  %v64_v15 = vcombine.high %v56_v11, %v56_v11  ;;  %v63_v16 = vrot.slane %v49_v12, %v1317_v41  ;;  %v1138_v17 = vld [vmem:[%s1444_s1 + $0x178] sm:$0xff]   ;;  %v78_v24 = vpack.c.bf16 %v56_v11, %v56_v11  ;;  %vm781_vm0 = vcmask 1044480   ;;  %s1171_s23 = smov [#allocation2]  }
  0x38   :  { %1024 = vmatpush3.bf16.msra.mxu0 %v1132_v6  ;;  %v1137_v14 = vld [vmem:[%s1444_s1 + $0x1b0] sm:$0xff]   ;;  %v1139_v18 = vld [vmem:[%s1444_s1 + $0x1f8] sm:$0xff]   ;;  %v1143_v26 = vld [vmem:[%s1446_s3] sm:$0x1f]   ;;  %v1169_v27 = vmov 0.0   ;;  %vm1170_vm1 = vmmov 0  }
  0x39   :  { %1046 = vmatpush3.bf16.msra.mxu1 %v1133_v7  ;;  %1025 = vmatprep.subr.bf16.mxu0 %v1134_v8  ;;  %v79_v19 = vpack.c.bf16 %v64_v15, %v64_v15  ;;  %v65_v20 = vcombine.high %v63_v16, %v63_v16  ;;  %v1140_v21 = vld [vmem:[%s1444_s1 + $0x138] sm:$0xff]   ;;  %v80_v25 = vpack.c.bf16 %v63_v16, %v63_v16  ;;  %v783_v28 = vsel %vm781_vm0, %v1143_v26, 0  ;;  %v827_v29 = vld [vmem:[%s1448_s5] sm:$0xf]  ;;  %s891_s24 = sshll.u32 %s1171_s23, 4  ;;  %s892_s24 = int_to_ptr.vmem [resolvable:$true] %s891_s24 }
  0x3a   :  { %1047 = vmatprep.subr.bf16.mxu1 %v1135_v9  ;;  %v1141_v22 = vld [vmem:[%s1444_s1 + $0x1b8] sm:$0xff]   ;;  %vm839_vm2 = vcmask 1043456   ;;  %v899_v33 = vld [vmem:[%s1445_s2] ss:$0 sm:$0xff]  ;;  %vm777_vm3 = vcmask 80896   ;;  %vm835_vm4 = vcmask 64512   ;;  %p1149_p1 = scmp.lt.s32.totalorder %s892_s24, %s892_s24 }
  0x3b   :  { %v81_v23 = vpack.c.bf16 %v65_v20, %v65_v20  ;;  %713 = vmatprep.mubr.bf16.mxu0 %v79_v19  ;;  %v841_v30 = vsel %vm839_vm2, %v827_v29, 0  ;;  %v964_v58 = vld [vmem:[%s1447_s4] ss:$0 sm:$0xff]  ;;  %s1144_s4 = scalar_lea.vmem %s892_s24, 16  ;;  %s1148_s25 = scalar_lea.vmem %s892_s24, 32 }
  0x3c   :  { %1026 = vmatpush3.bf16.msra.mxu0 %v1136_v13  ;;  %v967_v2 = vld [vmem:[%s1449_s6] ss:$0 sm:$0xff]  ;;  %p1145_p0 = scmp.ne.s32.totalorder %s892_s24, %s1144_s4  ;;  %p1150_p2 = scmp.lt.s32.totalorder %s1148_s25, %s1144_s4 }
  0x3d   :  { %1048 = vmatpush3.bf16.msra.mxu1 %v1137_v14  ;;  %1027 = vmatprep.subr.bf16.mxu0 %v1138_v17 }
  0x3e   :  { %1049 = vmatprep.subr.bf16.mxu1 %v1139_v18  ;;  %753 = vmatprep.mubr.bf16.mxu1 %v81_v23  ;;  %p1151_p3 = por %p1150_p2, %p1149_p1 }
  0x40   :  { %1028 = vmatpush3.bf16.msra.mxu0 %v1140_v21  ;;  %p1152_p4 = pnand %p1151_p3, %p1145_p0 }
  0x41   :  { %1050 = vmatpush3.bf16.msra.mxu1 %v1141_v22  ;;  %1061 = vmatprep.subr.bf16.mxu0 %v1169_v27 }
  0x42   :  { %1067 = vmatprep.subr.bf16.mxu1 %v1169_v27 }
  0x43   :  { %714 = vmatmul.mubr.bf16.vlgmr.msra.gmra.mrb[4].mxu0 %v78_v24 }
  0x44   :  { %754 = vmatmul.mubr.bf16.vlgmr.msra.gmra.mrb[4].mxu1 %v80_v25  ;;  %1062 = vmatpush3.bf16.msra.mxu0 %v783_v28 }
  0x45   :  { %1063 = vmatprep.mubr.msk.bf16.mxu0 %vm1170_vm1, %v1169_v27  ;;  %1069 = vmatprep.mubr.msk.bf16.mxu1 %vm1170_vm1, %v1169_v27 }
  0x46   :  { %1068 = vmatpush3.bf16.msra.mxu1 %v841_v30 }
  0xf6   :  { %v985_v31 = vpop.f32.mrb[0].mxu0 }
  0xf7   :  { %v1007_v32 = vpop.f32.mrb[0].mxu1  ;;  %v986_v34 = vpop.f32.mrb[1].mxu0 }
  0xf8   :  { %v1008_v35 = vpop.f32.mrb[1].mxu1  ;;  %v987_v36 = vadd.f32 %v986_v34, %v985_v31  ;;  %v988_v38 = vpop.f32.mrb[2].mxu0 }
  0xf9   :  { %v1009_v37 = vadd.f32 %v1008_v35, %v1007_v32  ;;  %v1010_v39 = vpop.f32.mrb[2].mxu1  ;;  %v989_v40 = vpop.f32.mrb[3].mxu0 }
  0xfa   :  { %v1011_v41 = vpop.f32.mrb[3].mxu1  ;;  %v636_v42 = vadd.f32 %v987_v36, %v899_v33 }
  0xfc   :  { %v676_v43 = vadd.f32 %v1009_v37, %v636_v42 }
 0x116   :  { %v1029_v44 = vpop.f32.mrb[4].mxu0 }
 0x117   :  { %v1051_v45 = vpop.f32.mrb[4].mxu1  ;;  %v1030_v46 = vpop.f32.mrb[5].mxu0 }
 0x118   :  { %v1052_v47 = vpop.f32.mrb[5].mxu1  ;;  %v1031_v48 = vadd.f32 %v1030_v46, %v1029_v44  ;;  %v1032_v50 = vpop.f32.mrb[6].mxu0 }
 0x119   :  { %v1053_v49 = vadd.f32 %v1052_v47, %v1051_v45  ;;  %v1054_v51 = vpop.f32.mrb[6].mxu1  ;;  %v1033_v52 = vpop.f32.mrb[7].mxu0 }
 0x11a   :  { %v1055_v53 = vpop.f32.mrb[7].mxu1  ;;  %v716_v54 = vadd.f32 %v1031_v48, %v676_v43 }
 0x11c   :  { %v756_v55 = vadd.f32 %v1053_v49, %v716_v54 }
 0x11e   :  { %v761_v56 = vmax.f32 %v756_v55, 0.0 }
 0x120   :  { %v762_v57 = vpack.c.bf16 %v761_v56, %v761_v56 }
 0x122   :  { %1064 = vmatmul.mubr.msk.bf16.vlgmr.msra.gmra.mrb[8].mxu0 %vm777_vm3, %v762_v57 }
 0x1f5   :  { %v819_v59 = vpop.f32.mrb[8].mxu0 }
 0x1f6   :  { %v820_v60 = vadd.f32 %v964_v58, %v819_v59  ;;  %v1065_v61 = vpop.f32.mrb[9].mxu0 }
 0x1f7   :  { %v822_v62 = vpop.f32.mrb[10].mxu0 }
 0x1f8   :  { %v825_v63 = vmax.f32 %v820_v60, 0.0  ;;  %v1066_v0 = vpop.f32.mrb[11].mxu0 }
 0x1fa   :  { %v826_v1 = vpack.c.bf16 %v825_v63, %v825_v63 }
 0x1fc   :  { %1070 = vmatmul.mubr.msk.bf16.vlgmr.msra.gmra.mrb[8].mxu1 %vm835_vm4, %v826_v1 }
 0x2cf   :  { %v877_v3 = vpop.f32.mrb[8].mxu1 }
 0x2d0   :  { %v878_v4 = vadd.f32 %v967_v2, %v877_v3  ;;  %v1071_v5 = vpop.f32.mrb[9].mxu1 }
 0x2d1   :  { %v880_v6 = vpop.f32.mrb[10].mxu1 }
 0x2d2   :  { %v883_v7 = vpack.c.bf16 %v878_v4, %v878_v4  ;;  %v1072_v8 = vpop.f32.mrb[11].mxu1 }
 0x2d4   :  { %884 = vst [vmem:[#allocation2] sm:$0x1] %v883_v7 }
 0x2d5   :  { %1155 = shalt.err (!%p1152_p4)
}
 0x2d6   :  { %s1156_s27 = scalar_lea.hbm %s1450_s7, 16 }
 0x2d7   :  { %p1157_p5 = scmp.ne.s32.totalorder %s1450_s7, %s1156_s27  ;;  %p1160_p6 = scmp.lt.u32.totalorder %s1156_s27, %s1450_s7 }
 0x2d9   :  { %p1162_p7 = pnand %p1160_p6, %p1157_p5 }
 0x2db   :  { %1165 = shalt.err (!%p1162_p7)
}
 0x2dc   :  { %894 = dma.vmem_to_hbm [thread:$0]  %s892_s24, 16, %s1450_s7, [#allocation3]  }
 0x2dd   :  { %1166 = dma.done.wait [#allocation3], 16  }
 0x2de   :  { %1167 = vsyncadd [#allocation3], 4294967280 }
 0x2df   :  { %898 = vsyncpa [#allocation3], 1 }

</bundles_post_ra>
